<compile_context>
chip_gen: v7x
topology: tpu7x:2x2x1
jax: 0.10.0
libtpu: 0.0.40
codegen_flags: <defaults>
</compile_context>

<pallas_src>
import functools

import jax
import jax.numpy as jnp
import numpy as np
from jax.experimental import pallas as pl
from jax.experimental.pallas import tpu as pltpu


def _spatial_att_kernel(l_ref, r_ref, masks_ref, w1_ref, w2_ref, out_ref,
                        xbuf_ref, slab1_ref, slab2_ref, *, H, W):
    HW = H * W
    Cl = l_ref.shape[0]
    Cin = xbuf_ref.shape[0]
    Cmid = w1_ref.shape[0]

    # Fuse l and r into one sublane-stacked (Cin, HW) tile (no HBM concat).
    xbuf_ref[0:Cl, :] = l_ref[...]
    xbuf_ref[Cl:Cin, :] = r_ref[...]
    x = xbuf_ref[...]

    # Host-precomputed boundary masks, loaded once and reused by both convs.
    m_rows = [masks_ref[t:t + 1, :] for t in range(9)]       # each (1, HW)

    def im2col(v, slab_ref, rows):
        # Stack the 9 rolled+masked taps tap-major into slab_ref (9*rows, HW).
        for ky in range(3):
            for kx in range(3):
                t = ky * 3 + kx
                if t == 4:                    # center tap: shift 0, mask == 1
                    vm = v
                else:
                    shift = (-((ky - 1) * W + (kx - 1))) % HW
                    vm = pltpu.roll(v, shift, axis=1) * m_rows[t]
                slab_ref[t * rows:(t + 1) * rows, :] = vm

    # conv1 (no bias): single K = 9*Cin MXU matmul.
    im2col(x, slab1_ref, Cin)
    y1 = jnp.dot(w1_ref[...], slab1_ref[...],
                 preferred_element_type=jnp.float32)         # (Cmid, HW)

    # conv2: bias folded into the matmul via a constant-1 slab row.
    im2col(y1, slab2_ref, Cmid)
    slab2_ref[9 * Cmid:9 * Cmid + 1, :] = m_rows[4]          # all-ones row
    y2 = jnp.dot(w2_ref[...], slab2_ref[...],
                 preferred_element_type=jnp.float32)         # (Cout, HW)

    # LeakyReLU(negative_slope=0.01).
    out_ref[...] = jnp.where(y2 >= 0, y2, 0.01 * y2).astype(out_ref.dtype)


def _boundary_masks(H, W):
    """(9, H*W) f32 validity masks for a 3x3 SAME conv, tap t = ky*3 + kx."""
    pos = np.arange(H * W)
    row, col = pos // W, pos % W
    row_ok = [row >= 1, np.ones(H * W, bool), row <= H - 2]
    col_ok = [col >= 1, np.ones(H * W, bool), col <= W - 2]
    m = np.stack([(row_ok[ky] & col_ok[kx]).astype(np.float32)
                  for ky in range(3) for kx in range(3)], axis=0)
    return jnp.asarray(m)


def _repack_conv_weight(w):
    """OIHW (Co, Ci, 3, 3) -> lane-dense (Co, 9*Ci), column = (ky*3+kx)*Ci+ci."""
    co, ci = w.shape[0], w.shape[1]
    return jnp.transpose(w, (0, 2, 3, 1)).reshape(co, 9 * ci)


def spatial_att(l, r, w1, w2, b2):
    """l, r: (N, num_fea, H, W) NCHW f32.
       w1: (2F, 2F, 3, 3) OIHW, w2: (fea_out, 2F, 3, 3) OIHW, b2: (fea_out,)."""
    N, Cl, H, W = l.shape
    Cr = r.shape[1]
    Cmid, Cin = w1.shape[0], w1.shape[1]
    Cout = w2.shape[0]
    HW = H * W
    assert Cl + Cr == Cin

    # Metadata-only reshapes (no HBM copy): spatial goes to the lane axis.
    l2 = l.reshape(N, Cl, HW)
    r2 = r.reshape(N, Cr, HW)

    masks = _boundary_masks(H, W)                           # (9, HW)
    w1_2d = _repack_conv_weight(w1)                         # (Cmid, 9*Cin)
    w2_2d = jnp.concatenate([_repack_conv_weight(w2),       # (Cout, 9*Cmid+1)
                             b2.reshape(Cout, 1)], axis=1)

    kernel = functools.partial(_spatial_att_kernel, H=H, W=W)

    out = pl.pallas_call(
        kernel,
        out_shape=jax.ShapeDtypeStruct((N, Cout, HW), jnp.float32),
        grid_spec=pltpu.PrefetchScalarGridSpec(
            num_scalar_prefetch=0,
            grid=(N,),
            in_specs=[
                pl.BlockSpec((None, Cl, HW), lambda n: (n, 0, 0)),
                pl.BlockSpec((None, Cr, HW), lambda n: (n, 0, 0)),
                pl.BlockSpec((9, HW), lambda n: (0, 0)),
                pl.BlockSpec((Cmid, 9 * Cin), lambda n: (0, 0)),
                pl.BlockSpec((Cout, 9 * Cmid + 1), lambda n: (0, 0)),
            ],
            out_specs=pl.BlockSpec((None, Cout, HW), lambda n: (n, 0, 0)),
            scratch_shapes=[
                pltpu.VMEM((Cin, HW), jnp.float32),          # fused [l; r]
                pltpu.VMEM((9 * Cin, HW), jnp.float32),      # conv1 im2col slab
                pltpu.VMEM((9 * Cmid + 1, HW), jnp.float32), # conv2 slab + ones
            ]),
        compiler_params=pltpu.CompilerParams(
            dimension_semantics=("parallel",)),
    )(l2, r2, masks, w1_2d, w2_2d)

    return out.reshape(N, Cout, H, W)


def spatial_att_reference(l, r, w1, w2, b2):
    """Pure-JAX reference (NCHW / OIHW conv) for validation."""
    x = jnp.concatenate([l, r], axis=1)
    dn = ("NCHW", "OIHW", "NCHW")
    y1 = jax.lax.conv_general_dilated(x, w1, (1, 1), "SAME",
                                      dimension_numbers=dn)
    y2 = jax.lax.conv_general_dilated(y1, w2, (1, 1), "SAME",
                                      dimension_numbers=dn)
    y2 = y2 + b2.reshape(1, -1, 1, 1)
    return jnp.where(y2 >= 0, y2, 0.01 * y2)


if __name__ == "__main__":
    # Small deterministic shapes: batch=2, num_fea=4 (=> Cin=8), fea_out=4, 16x16.
    N, H, W = 2, 16, 16
    num_fea, fea_out = 4, 4
    Cin = num_fea * 2

    key = jax.random.PRNGKey(0)
    k_l, k_r, k_w1, k_w2, k_b2 = jax.random.split(key, 5)

    l = jax.random.normal(k_l, (N, num_fea, H, W), jnp.float32)
    r = jax.random.normal(k_r, (N, num_fea, H, W), jnp.float32)

    # Deterministic synthetic parameters (PyTorch OIHW layout).
    w1 = 0.1 * jax.random.normal(k_w1, (Cin, Cin, 3, 3), jnp.float32)
    w2 = 0.1 * jax.random.normal(k_w2, (fea_out, Cin, 3, 3), jnp.float32)
    b2 = 0.1 * jax.random.normal(k_b2, (fea_out,), jnp.float32)

    out = spatial_att(l, r, w1, w2, b2)
    out = jax.block_until_ready(out)

    ref = jax.block_until_ready(spatial_att_reference(l, r, w1, w2, b2))
    np.testing.assert_allclose(np.asarray(out), np.asarray(ref),
                               rtol=1e-4, atol=1e-4)

    print("KERNEL_OK")
</pallas_src>

<mosaic_0001>
module attributes {stable_mosaic.version = 11 : i64} {
  func.func @_spatial_att_kernel(%arg0: i32, %arg1: memref<1x4x256xf32, #tpu.memory_space<vmem>>, %arg2: memref<1x4x256xf32, #tpu.memory_space<vmem>>, %arg3: memref<9x256xf32, #tpu.memory_space<vmem>>, %arg4: memref<8x72xf32, #tpu.memory_space<vmem>>, %arg5: memref<4x73xf32, #tpu.memory_space<vmem>>, %arg6: memref<1x4x256xf32, #tpu.memory_space<vmem>>, %arg7: memref<8x256xf32, #tpu.memory_space<vmem>>, %arg8: memref<72x256xf32, #tpu.memory_space<vmem>>, %arg9: memref<73x256xf32, #tpu.memory_space<vmem>>) attributes {dimension_semantics = [#tpu.dimension_semantics<parallel>], iteration_bounds = array<i64: 2>, scalar_prefetch = 0 : i64, scratch_operands = 3 : i64, tpu.core_type = #tpu.core_type<tc>, window_params = [{transform_indices = @transform_0, window_bounds = array<i64: 1, 4, 256>}, {transform_indices = @transform_1, window_bounds = array<i64: 1, 4, 256>}, {pipeline_mode = #tpu.pipeline_mode<synchronous>, transform_indices = @transform_2, window_bounds = array<i64: 9, 256>}, {pipeline_mode = #tpu.pipeline_mode<synchronous>, transform_indices = @transform_3, window_bounds = array<i64: 8, 72>}, {pipeline_mode = #tpu.pipeline_mode<synchronous>, transform_indices = @transform_4, window_bounds = array<i64: 4, 73>}, {transform_indices = @transform_5, window_bounds = array<i64: 1, 4, 256>}]} {
    %c0 = arith.constant 0 : index
    %c0_0 = arith.constant 0 : index
    %c0_1 = arith.constant 0 : index
    %0 = vector.load %arg1[%c0, %c0_0, %c0_1] : memref<1x4x256xf32, #tpu.memory_space<vmem>>, vector<1x4x256xf32>
    %1 = vector.shape_cast %0 : vector<1x4x256xf32> to vector<4x256xf32>
    %c0_2 = arith.constant 0 : index
    %c0_3 = arith.constant 0 : index
    %2 = vector.load %arg7[%c0_2, %c0_3] : memref<8x256xf32, #tpu.memory_space<vmem>>, vector<4x256xf32>
    tpu.vector_store %arg7[%c0_2, %c0_3], %1 {strides = array<i32>} : memref<8x256xf32, #tpu.memory_space<vmem>>, vector<4x256xf32>,
    %c0_4 = arith.constant 0 : index
    %c0_5 = arith.constant 0 : index
    %c0_6 = arith.constant 0 : index
    %3 = vector.load %arg2[%c0_4, %c0_5, %c0_6] : memref<1x4x256xf32, #tpu.memory_space<vmem>>, vector<1x4x256xf32>
    %4 = vector.shape_cast %3 : vector<1x4x256xf32> to vector<4x256xf32>
    %c4 = arith.constant 4 : index
    %c0_7 = arith.constant 0 : index
    %5 = vector.load %arg7[%c4, %c0_7] : memref<8x256xf32, #tpu.memory_space<vmem>>, vector<4x256xf32>
    tpu.vector_store %arg7[%c4, %c0_7], %4 {strides = array<i32>} : memref<8x256xf32, #tpu.memory_space<vmem>>, vector<4x256xf32>,
    %c0_8 = arith.constant 0 : index
    %c0_9 = arith.constant 0 : index
    %6 = vector.load %arg7[%c0_8, %c0_9] : memref<8x256xf32, #tpu.memory_space<vmem>>, vector<8x256xf32>
    %c0_10 = arith.constant 0 : index
    %c0_11 = arith.constant 0 : index
    %7 = vector.load %arg3[%c0_10, %c0_11] : memref<9x256xf32, #tpu.memory_space<vmem>>, vector<1x256xf32>
    %c1 = arith.constant 1 : index
    %c0_12 = arith.constant 0 : index
    %8 = vector.load %arg3[%c1, %c0_12] : memref<9x256xf32, #tpu.memory_space<vmem>>, vector<1x256xf32>
    %c2 = arith.constant 2 : index
    %c0_13 = arith.constant 0 : index
    %9 = vector.load %arg3[%c2, %c0_13] : memref<9x256xf32, #tpu.memory_space<vmem>>, vector<1x256xf32>
    %c3 = arith.constant 3 : index
    %c0_14 = arith.constant 0 : index
    %10 = vector.load %arg3[%c3, %c0_14] : memref<9x256xf32, #tpu.memory_space<vmem>>, vector<1x256xf32>
    %c4_15 = arith.constant 4 : index
    %c0_16 = arith.constant 0 : index
    %11 = vector.load %arg3[%c4_15, %c0_16] : memref<9x256xf32, #tpu.memory_space<vmem>>, vector<1x256xf32>
    %c5 = arith.constant 5 : index
    %c0_17 = arith.constant 0 : index
    %12 = vector.load %arg3[%c5, %c0_17] : memref<9x256xf32, #tpu.memory_space<vmem>>, vector<1x256xf32>
    %c6 = arith.constant 6 : index
    %c0_18 = arith.constant 0 : index
    %13 = vector.load %arg3[%c6, %c0_18] : memref<9x256xf32, #tpu.memory_space<vmem>>, vector<1x256xf32>
    %c7 = arith.constant 7 : index
    %c0_19 = arith.constant 0 : index
    %14 = vector.load %arg3[%c7, %c0_19] : memref<9x256xf32, #tpu.memory_space<vmem>>, vector<1x256xf32>
    %c8 = arith.constant 8 : index
    %c0_20 = arith.constant 0 : index
    %15 = vector.load %arg3[%c8, %c0_20] : memref<9x256xf32, #tpu.memory_space<vmem>>, vector<1x256xf32>
    %c17_i32 = arith.constant 17 : i32
    %16 = tpu.dynamic_rotate %6 by %c17_i32 dim 1 : vector<8x256xf32>, i32 -> vector<8x256xf32>
    %17 = vector.broadcast %7 : vector<1x256xf32> to vector<8x256xf32>
    %18 = arith.mulf %16, %17 : vector<8x256xf32>
    %c0_21 = arith.constant 0 : index
    %c0_22 = arith.constant 0 : index
    %19 = vector.load %arg8[%c0_21, %c0_22] : memref<72x256xf32, #tpu.memory_space<vmem>>, vector<8x256xf32>
    tpu.vector_store %arg8[%c0_21, %c0_22], %18 {strides = array<i32>} : memref<72x256xf32, #tpu.memory_space<vmem>>, vector<8x256xf32>,
    %c16_i32 = arith.constant 16 : i32
    %20 = tpu.dynamic_rotate %6 by %c16_i32 dim 1 : vector<8x256xf32>, i32 -> vector<8x256xf32>
    %21 = vector.broadcast %8 : vector<1x256xf32> to vector<8x256xf32>
    %22 = arith.mulf %20, %21 : vector<8x256xf32>
    %c8_23 = arith.constant 8 : index
    %c0_24 = arith.constant 0 : index
    %23 = vector.load %arg8[%c8_23, %c0_24] : memref<72x256xf32, #tpu.memory_space<vmem>>, vector<8x256xf32>
    tpu.vector_store %arg8[%c8_23, %c0_24], %22 {strides = array<i32>} : memref<72x256xf32, #tpu.memory_space<vmem>>, vector<8x256xf32>,
    %c15_i32 = arith.constant 15 : i32
    %24 = tpu.dynamic_rotate %6 by %c15_i32 dim 1 : vector<8x256xf32>, i32 -> vector<8x256xf32>
    %25 = vector.broadcast %9 : vector<1x256xf32> to vector<8x256xf32>
    %26 = arith.mulf %24, %25 : vector<8x256xf32>
    %c16 = arith.constant 16 : index
    %c0_25 = arith.constant 0 : index
    %27 = vector.load %arg8[%c16, %c0_25] : memref<72x256xf32, #tpu.memory_space<vmem>>, vector<8x256xf32>
    tpu.vector_store %arg8[%c16, %c0_25], %26 {strides = array<i32>} : memref<72x256xf32, #tpu.memory_space<vmem>>, vector<8x256xf32>,
    %c1_i32 = arith.constant 1 : i32
    %28 = tpu.dynamic_rotate %6 by %c1_i32 dim 1 : vector<8x256xf32>, i32 -> vector<8x256xf32>
    %29 = vector.broadcast %10 : vector<1x256xf32> to vector<8x256xf32>
    %30 = arith.mulf %28, %29 : vector<8x256xf32>
    %c24 = arith.constant 24 : index
    %c0_26 = arith.constant 0 : index
    %31 = vector.load %arg8[%c24, %c0_26] : memref<72x256xf32, #tpu.memory_space<vmem>>, vector<8x256xf32>
    tpu.vector_store %arg8[%c24, %c0_26], %30 {strides = array<i32>} : memref<72x256xf32, #tpu.memory_space<vmem>>, vector<8x256xf32>,
    %c32 = arith.constant 32 : index
    %c0_27 = arith.constant 0 : index
    %32 = vector.load %arg8[%c32, %c0_27] : memref<72x256xf32, #tpu.memory_space<vmem>>, vector<8x256xf32>
    tpu.vector_store %arg8[%c32, %c0_27], %6 {strides = array<i32>} : memref<72x256xf32, #tpu.memory_space<vmem>>, vector<8x256xf32>,
    %c255_i32 = arith.constant 255 : i32
    %33 = tpu.dynamic_rotate %6 by %c255_i32 dim 1 : vector<8x256xf32>, i32 -> vector<8x256xf32>
    %34 = vector.broadcast %12 : vector<1x256xf32> to vector<8x256xf32>
    %35 = arith.mulf %33, %34 : vector<8x256xf32>
    %c40 = arith.constant 40 : index
    %c0_28 = arith.constant 0 : index
    %36 = vector.load %arg8[%c40, %c0_28] : memref<72x256xf32, #tpu.memory_space<vmem>>, vector<8x256xf32>
    tpu.vector_store %arg8[%c40, %c0_28], %35 {strides = array<i32>} : memref<72x256xf32, #tpu.memory_space<vmem>>, vector<8x256xf32>,
    %c241_i32 = arith.constant 241 : i32
    %37 = tpu.dynamic_rotate %6 by %c241_i32 dim 1 : vector<8x256xf32>, i32 -> vector<8x256xf32>
    %38 = vector.broadcast %13 : vector<1x256xf32> to vector<8x256xf32>
    %39 = arith.mulf %37, %38 : vector<8x256xf32>
    %c48 = arith.constant 48 : index
    %c0_29 = arith.constant 0 : index
    %40 = vector.load %arg8[%c48, %c0_29] : memref<72x256xf32, #tpu.memory_space<vmem>>, vector<8x256xf32>
    tpu.vector_store %arg8[%c48, %c0_29], %39 {strides = array<i32>} : memref<72x256xf32, #tpu.memory_space<vmem>>, vector<8x256xf32>,
    %c240_i32 = arith.constant 240 : i32
    %41 = tpu.dynamic_rotate %6 by %c240_i32 dim 1 : vector<8x256xf32>, i32 -> vector<8x256xf32>
    %42 = vector.broadcast %14 : vector<1x256xf32> to vector<8x256xf32>
    %43 = arith.mulf %41, %42 : vector<8x256xf32>
    %c56 = arith.constant 56 : index
    %c0_30 = arith.constant 0 : index
    %44 = vector.load %arg8[%c56, %c0_30] : memref<72x256xf32, #tpu.memory_space<vmem>>, vector<8x256xf32>
    tpu.vector_store %arg8[%c56, %c0_30], %43 {strides = array<i32>} : memref<72x256xf32, #tpu.memory_space<vmem>>, vector<8x256xf32>,
    %c239_i32 = arith.constant 239 : i32
    %45 = tpu.dynamic_rotate %6 by %c239_i32 dim 1 : vector<8x256xf32>, i32 -> vector<8x256xf32>
    %46 = vector.broadcast %15 : vector<1x256xf32> to vector<8x256xf32>
    %47 = arith.mulf %45, %46 : vector<8x256xf32>
    %c64 = arith.constant 64 : index
    %c0_31 = arith.constant 0 : index
    %48 = vector.load %arg8[%c64, %c0_31] : memref<72x256xf32, #tpu.memory_space<vmem>>, vector<8x256xf32>
    tpu.vector_store %arg8[%c64, %c0_31], %47 {strides = array<i32>} : memref<72x256xf32, #tpu.memory_space<vmem>>, vector<8x256xf32>,
    %c0_32 = arith.constant 0 : index
    %c0_33 = arith.constant 0 : index
    %49 = vector.load %arg4[%c0_32, %c0_33] : memref<8x72xf32, #tpu.memory_space<vmem>>, vector<8x72xf32>
    %c0_34 = arith.constant 0 : index
    %c0_35 = arith.constant 0 : index
    %50 = vector.load %arg8[%c0_34, %c0_35] : memref<72x256xf32, #tpu.memory_space<vmem>>, vector<72x256xf32>
    %cst = arith.constant dense<0.000000e+00> : vector<8x256xf32>
    %51 = tpu.matmul %49, %50, %cst {dimension_numbers = #tpu.dot_dimension_numbers<[1], [0], [0], [1], [0, 0, 1, 1], [], []>} : vector<8x72xf32>, vector<72x256xf32>, vector<8x256xf32> -> vector<8x256xf32>
    %c17_i32_36 = arith.constant 17 : i32
    %52 = tpu.dynamic_rotate %51 by %c17_i32_36 dim 1 : vector<8x256xf32>, i32 -> vector<8x256xf32>
    %53 = vector.broadcast %7 : vector<1x256xf32> to vector<8x256xf32>
    %54 = arith.mulf %52, %53 : vector<8x256xf32>
    %c0_37 = arith.constant 0 : index
    %c0_38 = arith.constant 0 : index
    %55 = vector.load %arg9[%c0_37, %c0_38] : memref<73x256xf32, #tpu.memory_space<vmem>>, vector<8x256xf32>
    tpu.vector_store %arg9[%c0_37, %c0_38], %54 {strides = array<i32>} : memref<73x256xf32, #tpu.memory_space<vmem>>, vector<8x256xf32>,
    %c16_i32_39 = arith.constant 16 : i32
    %56 = tpu.dynamic_rotate %51 by %c16_i32_39 dim 1 : vector<8x256xf32>, i32 -> vector<8x256xf32>
    %57 = vector.broadcast %8 : vector<1x256xf32> to vector<8x256xf32>
    %58 = arith.mulf %56, %57 : vector<8x256xf32>
    %c8_40 = arith.constant 8 : index
    %c0_41 = arith.constant 0 : index
    %59 = vector.load %arg9[%c8_40, %c0_41] : memref<73x256xf32, #tpu.memory_space<vmem>>, vector<8x256xf32>
    tpu.vector_store %arg9[%c8_40, %c0_41], %58 {strides = array<i32>} : memref<73x256xf32, #tpu.memory_space<vmem>>, vector<8x256xf32>,
    %c15_i32_42 = arith.constant 15 : i32
    %60 = tpu.dynamic_rotate %51 by %c15_i32_42 dim 1 : vector<8x256xf32>, i32 -> vector<8x256xf32>
    %61 = vector.broadcast %9 : vector<1x256xf32> to vector<8x256xf32>
    %62 = arith.mulf %60, %61 : vector<8x256xf32>
    %c16_43 = arith.constant 16 : index
    %c0_44 = arith.constant 0 : index
    %63 = vector.load %arg9[%c16_43, %c0_44] : memref<73x256xf32, #tpu.memory_space<vmem>>, vector<8x256xf32>
    tpu.vector_store %arg9[%c16_43, %c0_44], %62 {strides = array<i32>} : memref<73x256xf32, #tpu.memory_space<vmem>>, vector<8x256xf32>,
    %c1_i32_45 = arith.constant 1 : i32
    %64 = tpu.dynamic_rotate %51 by %c1_i32_45 dim 1 : vector<8x256xf32>, i32 -> vector<8x256xf32>
    %65 = vector.broadcast %10 : vector<1x256xf32> to vector<8x256xf32>
    %66 = arith.mulf %64, %65 : vector<8x256xf32>
    %c24_46 = arith.constant 24 : index
    %c0_47 = arith.constant 0 : index
    %67 = vector.load %arg9[%c24_46, %c0_47] : memref<73x256xf32, #tpu.memory_space<vmem>>, vector<8x256xf32>
    tpu.vector_store %arg9[%c24_46, %c0_47], %66 {strides = array<i32>} : memref<73x256xf32, #tpu.memory_space<vmem>>, vector<8x256xf32>,
    %c32_48 = arith.constant 32 : index
    %c0_49 = arith.constant 0 : index
    %68 = vector.load %arg9[%c32_48, %c0_49] : memref<73x256xf32, #tpu.memory_space<vmem>>, vector<8x256xf32>
    tpu.vector_store %arg9[%c32_48, %c0_49], %51 {strides = array<i32>} : memref<73x256xf32, #tpu.memory_space<vmem>>, vector<8x256xf32>,
    %c255_i32_50 = arith.constant 255 : i32
    %69 = tpu.dynamic_rotate %51 by %c255_i32_50 dim 1 : vector<8x256xf32>, i32 -> vector<8x256xf32>
    %70 = vector.broadcast %12 : vector<1x256xf32> to vector<8x256xf32>
    %71 = arith.mulf %69, %70 : vector<8x256xf32>
    %c40_51 = arith.constant 40 : index
    %c0_52 = arith.constant 0 : index
    %72 = vector.load %arg9[%c40_51, %c0_52] : memref<73x256xf32, #tpu.memory_space<vmem>>, vector<8x256xf32>
    tpu.vector_store %arg9[%c40_51, %c0_52], %71 {strides = array<i32>} : memref<73x256xf32, #tpu.memory_space<vmem>>, vector<8x256xf32>,
    %c241_i32_53 = arith.constant 241 : i32
    %73 = tpu.dynamic_rotate %51 by %c241_i32_53 dim 1 : vector<8x256xf32>, i32 -> vector<8x256xf32>
    %74 = vector.broadcast %13 : vector<1x256xf32> to vector<8x256xf32>
    %75 = arith.mulf %73, %74 : vector<8x256xf32>
    %c48_54 = arith.constant 48 : index
    %c0_55 = arith.constant 0 : index
    %76 = vector.load %arg9[%c48_54, %c0_55] : memref<73x256xf32, #tpu.memory_space<vmem>>, vector<8x256xf32>
    tpu.vector_store %arg9[%c48_54, %c0_55], %75 {strides = array<i32>} : memref<73x256xf32, #tpu.memory_space<vmem>>, vector<8x256xf32>,
    %c240_i32_56 = arith.constant 240 : i32
    %77 = tpu.dynamic_rotate %51 by %c240_i32_56 dim 1 : vector<8x256xf32>, i32 -> vector<8x256xf32>
    %78 = vector.broadcast %14 : vector<1x256xf32> to vector<8x256xf32>
    %79 = arith.mulf %77, %78 : vector<8x256xf32>
    %c56_57 = arith.constant 56 : index
    %c0_58 = arith.constant 0 : index
    %80 = vector.load %arg9[%c56_57, %c0_58] : memref<73x256xf32, #tpu.memory_space<vmem>>, vector<8x256xf32>
    tpu.vector_store %arg9[%c56_57, %c0_58], %79 {strides = array<i32>} : memref<73x256xf32, #tpu.memory_space<vmem>>, vector<8x256xf32>,
    %c239_i32_59 = arith.constant 239 : i32
    %81 = tpu.dynamic_rotate %51 by %c239_i32_59 dim 1 : vector<8x256xf32>, i32 -> vector<8x256xf32>
    %82 = vector.broadcast %15 : vector<1x256xf32> to vector<8x256xf32>
    %83 = arith.mulf %81, %82 : vector<8x256xf32>
    %c64_60 = arith.constant 64 : index
    %c0_61 = arith.constant 0 : index
    %84 = vector.load %arg9[%c64_60, %c0_61] : memref<73x256xf32, #tpu.memory_space<vmem>>, vector<8x256xf32>
    tpu.vector_store %arg9[%c64_60, %c0_61], %83 {strides = array<i32>} : memref<73x256xf32, #tpu.memory_space<vmem>>, vector<8x256xf32>,
    %c72 = arith.constant 72 : index
    %c0_62 = arith.constant 0 : index
    %85 = vector.load %arg9[%c72, %c0_62] : memref<73x256xf32, #tpu.memory_space<vmem>>, vector<1x256xf32>
    tpu.vector_store %arg9[%c72, %c0_62], %11 {strides = array<i32>} : memref<73x256xf32, #tpu.memory_space<vmem>>, vector<1x256xf32>,
    %c0_63 = arith.constant 0 : index
    %c0_64 = arith.constant 0 : index
    %86 = vector.load %arg5[%c0_63, %c0_64] : memref<4x73xf32, #tpu.memory_space<vmem>>, vector<4x73xf32>
    %c0_65 = arith.constant 0 : index
    %c0_66 = arith.constant 0 : index
    %87 = vector.load %arg9[%c0_65, %c0_66] : memref<73x256xf32, #tpu.memory_space<vmem>>, vector<73x256xf32>
    %cst_67 = arith.constant dense<0.000000e+00> : vector<4x256xf32>
    %88 = tpu.matmul %86, %87, %cst_67 {dimension_numbers = #tpu.dot_dimension_numbers<[1], [0], [0], [1], [0, 0, 1, 1], [], []>} : vector<4x73xf32>, vector<73x256xf32>, vector<4x256xf32> -> vector<4x256xf32>
    %cst_68 = arith.constant 0.000000e+00 : f32
    %89 = vector.broadcast %cst_68 : f32 to vector<4x256xf32>
    %90 = arith.cmpf oge, %88, %89 : vector<4x256xf32>
    %cst_69 = arith.constant 0.00999999977 : f32
    %91 = vector.broadcast %cst_69 : f32 to vector<4x256xf32>
    %92 = arith.mulf %91, %88 : vector<4x256xf32>
    %93 = arith.select %90, %88, %92 : vector<4x256xi1>, vector<4x256xf32>
    %c0_70 = arith.constant 0 : index
    %c0_71 = arith.constant 0 : index
    %c0_72 = arith.constant 0 : index
    %94 = vector.load %arg6[%c0_70, %c0_71, %c0_72] : memref<1x4x256xf32, #tpu.memory_space<vmem>>, vector<1x4x256xf32>
    %95 = vector.shape_cast %94 : vector<1x4x256xf32> to vector<4x256xf32>
    %96 = vector.shape_cast %93 : vector<4x256xf32> to vector<1x4x256xf32>
    tpu.vector_store %arg6[%c0_70, %c0_71, %c0_72], %96 {strides = array<i32>} : memref<1x4x256xf32, #tpu.memory_space<vmem>>, vector<1x4x256xf32>,
    return
  }
  func.func @transform_0(%arg0: i32) -> (i32, i32, i32) {
    %c0_i32 = arith.constant 0 : i32
    %c0_i32_0 = arith.constant 0 : i32
    %c0_i32_1 = arith.constant 0 : i32
    return %arg0, %c0_i32, %c0_i32_0 : i32, i32, i32
  }
  func.func @transform_1(%arg0: i32) -> (i32, i32, i32) {
    %c0_i32 = arith.constant 0 : i32
    %c0_i32_0 = arith.constant 0 : i32
    %c0_i32_1 = arith.constant 0 : i32
    return %arg0, %c0_i32, %c0_i32_0 : i32, i32, i32
  }
  func.func @transform_2(%arg0: i32) -> (i32, i32) {
    %c0_i32 = arith.constant 0 : i32
    %c0_i32_0 = arith.constant 0 : i32
    %c0_i32_1 = arith.constant 0 : i32
    return %c0_i32, %c0_i32_0 : i32, i32
  }
  func.func @transform_3(%arg0: i32) -> (i32, i32) {
    %c0_i32 = arith.constant 0 : i32
    %c0_i32_0 = arith.constant 0 : i32
    %c0_i32_1 = arith.constant 0 : i32
    return %c0_i32, %c0_i32_0 : i32, i32
  }
  func.func @transform_4(%arg0: i32) -> (i32, i32) {
    %c0_i32 = arith.constant 0 : i32
    %c0_i32_0 = arith.constant 0 : i32
    %c0_i32_1 = arith.constant 0 : i32
    return %c0_i32, %c0_i32_0 : i32, i32
  }
  func.func @transform_5(%arg0: i32) -> (i32, i32, i32) {
    %c0_i32 = arith.constant 0 : i32
    %c0_i32_0 = arith.constant 0 : i32
    %c0_i32_1 = arith.constant 0 : i32
    return %arg0, %c0_i32, %c0_i32_0 : i32, i32, i32
  }
}

</mosaic_0001>

<bundles_post_ra>
// kernel: tpu_custom_call.1
= control target key start
LH: loop header
LB: loop body
LE: loop exit
PB: predicated region body
PF: predicated region fallthrough
CT: control target
= control target key end

     0   :  { %s1747_s0 = inlined_call_operand.hbm [shape: f32[2,4,256], index: 0, kind: input, shape index: {}]   ;;  %s1748_s1 = inlined_call_operand.hbm [shape: f32[2,4,256], index: 1, kind: input, shape index: {}]   ;;  %s1749_s2 = inlined_call_operand.hbm [shape: f32[9,256], index: 2, kind: input, shape index: {}]   ;;  %s1750_s3 = inlined_call_operand.vmem [shape: f32[8,72], index: 3, kind: input, shape index: {}]   ;;  %s1751_s4 = inlined_call_operand.vmem [shape: f32[4,73], index: 4, kind: input, shape index: {}]   ;;  %s1752_s5 = inlined_call_operand.hbm [shape: f32[2,4,256], index: 5, kind: output, shape index: {}]  }
   0x1   :  { %1757 = sst [smem:[#allocation17_spill]] %s1749_s2 }
   0x2   :  { %10 = vsyncpa [#allocation6], 0 }
   0x3   :  { %12 = vsyncpa [#allocation6 + $0x1], 0 }
   0x4   :  { %13 = vsyncpa [#allocation9], 0 }
   0x5   :  { %15 = vsyncpa [#allocation9 + $0x1], 0 }
   0x6   :  { %16 = vsyncpa [#allocation7], 0 }
   0x7   :  { %18 = vsyncpa [#allocation7 + $0x1], 0  ;;  %s1269_s18 = smov 0   ;;  %s1271_s19 = smov 0  }
   0x8   :  { %s1273_s20 = smov 0   ;;  %s1275_s21 = smov 0  }
   0x9 LB: > { %s1290_s22 = sadd.s32 4294967295, %s1221_s21   ;;  %s918_s23 = sadd.s32 4294967294, %s1221_s21   ;;  %s1221_s21 = sphi %s1275_s21, %s1778_s21   ;;  %s1217_s20 = sphi %s1273_s20, %s1777_s20   ;;  %s1213_s19 = sphi %s1271_s19, %s1776_s19   ;;  %s1209_s18 = sphi %s1269_s18, %s1775_s18  }
   0xa   : > { %p44_p0 = scmp.ne.s32.totalorder %s1213_s19, %s1209_s18  ;;  %p1753_p1 = scmp.eq.s32.totalorder %s1290_s22, 0 }
   0xb   : > { %p163_p3 = scmp.eq.s32.totalorder %s918_s23, 1  ;;  %p919_p5 = scmp.ge.s32.totalorder %s1221_s21, 1 }
   0xc   : > { %p1299_p4 = por %p1753_p1, %p44_p0  ;;  %p170_p7 = scmp.lt.s32.totalorder %s1221_s21, 3 }
   0xd   : > { %p1304_p6 = por %p163_p3, %p44_p0  ;;  %s1223_s27 = smov [#allocation10]  }
   0xe   : > { %s1758_s24 = scalar_select %p1299_p4, 1, 0 }
   0xf   : > { %s1759_s25 = scalar_select %p1304_p6, 1, 0 }
  0x10   : > { %p1309_p8 = pnand %p919_p5, %p170_p7  ;;  %s182_s28 = sshll.u32 %s1223_s27, 4  ;;  %s1313_s28 = int_to_ptr.vmem [resolvable:$true] %s182_s28 }
  0x11   : > { %s1325_s30 = sadd.s32 1, %s1221_s21   ;;  %s31_s6 = sadd.s32 1, %s1217_s20 }
  0x12   : > { %s1760_s26 = scalar_select %p1309_p8, 1, 0 }
  0x13   : > { %p993_p9 = pneg %p1309_p8  ;;  %s28_s7 = ssub.s32 %s1221_s21, %s1325_s30 }
  0x14   : > { %s1762_s2 = sld [smem:[#allocation17_spill]] }
  0x15   : > { %p1320_p11 = pnand %p993_p9, %p1753_p1 }
  0x17   : > { %p1061_p13 = pneg %p1320_p11 }
  0x1a   : > { %s1059_s10 = scalar_lea.hbm %s1762_s2, 512 }
  0x1b   : > { %p1060_p12 = scmp.ne.s32.totalorder %s1762_s2, %s1059_s10  ;;  %p1066_p5 = scmp.lt.u32.totalorder %s1059_s10, %s1762_s2 }
  0x1d   : > { %p1062_p0 = pnand %p1061_p13, %p1060_p12 }
  0x1f   : > { %p1063_p3 = pneg %p1062_p0 }
  0x21   : > { %p1068_p7 = pnand %p1066_p5, %p1063_p3 }
  0x23   : > { %1071 = shalt.err (!%p1068_p7)
}
  0x24   : > { %s1072_s15 = scalar_lea.vmem %s1313_s28, 512  ;;  %p1080_p2 = scmp.lt.s32.totalorder %s1313_s28, %s1313_s28 }
  0x25   : > { %p1073_p9 = scmp.ne.s32.totalorder %s1313_s28, %s1072_s15  ;;  %p1081_p6 = scmp.lt.s32.totalorder %s1072_s15, %s1072_s15 }
  0x27   : > { %p1075_p10 = pnand %p1073_p9, %p1061_p13  ;;  %p1082_p4 = por %p1081_p6, %p1080_p2 }
  0x29   : > { %p1076_p1 = pneg %p1075_p10 }
  0x2b   : > { %p1083_p8 = pnand %p1082_p4, %p1076_p1 }
  0x2d   : > { %1086 = shalt.err (!%p1083_p8)
}
  0x2e   : > { %s1224_s16 = smov 256   ;;  %s1225_s17 = smov 16  }
  0x2f   : > { %996 = dma.hbm_to_vmem [thread:$0]  (!%p1320_p11), %s1762_s2, 512, %s1313_s28, [#allocation9], %s1224_s16, %s1224_s16, %s1225_s17  }
  0x30   : > { %p29_p2 = scmp.eq.s32.totalorder %s28_s7, 0  ;;  %p38_p1 = scmp.ne.s32.totalorder %s1217_s20, %s1213_s19 }
  0x31   : > { %p39_p4 = scmp.eq.s32.totalorder %s1221_s21, 0  ;;  %p1009_p6 = scmp.lt.s32.totalorder %s1221_s21, 2 }
  0x32   : > { %s1356_s8 = scalar_select %p29_p2, %s1217_s20, %s31_s6  }
  0x33   : > { %p40_p8 = por %p39_p4, %p38_p1  ;;  %p1764_p10 = scmp.eq.s32.totalorder %s1290_s22, 1 }
  0x34   : > { %1763 = sst [smem:[#allocation16_spill]] %s1356_s8  ;;  %s202_s10 = sand.u32 1, %s1217_s20  }
  0x35   : > { %p1360_p12 = por %p1764_p10, %p38_p1  ;;  %s942_s11 = sshll.u32 %s1221_s21, 7 }
  0x36   : > { %s1366_s12 = sshll.u32 %s202_s10, 3  ;;  %s1371_s28 = scalar_lea.hbm %s1747_s0, %s942_s11 }
  0x37   : > { %s1765_s9 = scalar_select %p1360_p12, 1, 0 }
  0x38   : > { %s206_s6 = scalar_lea.vmem [#allocation5], %s1366_s12  ;;  %p1374_p11 = pnand %p1009_p6, %p40_p8 }
  0x39   : > { %s214_s7 = sshll.u32 %s206_s6, 4  ;;  %s1383_s17 = scalar_lea.hbm %s1748_s1, %s942_s11  ;;  %s1378_s7 = int_to_ptr.vmem [resolvable:$true] %s214_s7 }
  0x3a   : > { %s203_s23 = scalar_lea.sflag [#allocation6], %s202_s10  ;;  %s1087_s27 = scalar_lea.hbm %s1371_s28, 128 }
  0x3b   : > { %p1088_p13 = scmp.ne.s32.totalorder %s1371_s28, %s1087_s27  ;;  %p1089_p0 = pneg %p1374_p11 }
  0x3c   : > { %s1092_s6 = scalar_lea.hbm %s1747_s0, 256  ;;  %p1093_p7 = scmp.lt.u32.totalorder %s1371_s28, %s1747_s0 }
  0x3d   : > { %p1090_p3 = pnand %p1089_p0, %p1088_p13  ;;  %p1094_p9 = scmp.lt.u32.totalorder %s1092_s6, %s1087_s27 }
  0x3e   : > { %p1096_p1 = scmp.lt.u32.totalorder %s1087_s27, %s1371_s28 }
  0x3f   : > { %p1091_p5 = pneg %p1090_p3  ;;  %p1095_p2 = por %p1094_p9, %p1093_p7 }
  0x41   : > { %p1097_p4 = por %p1096_p1, %p1095_p2 }
  0x43   : > { %p1098_p6 = pnand %p1097_p4, %p1091_p5 }
  0x45   : > { %1101 = shalt.err (!%p1098_p6)
}
  0x46   : > { %s1102_s10 = scalar_lea.vmem %s1378_s7, 128  ;;  %s1226_s11 = smov [#allocation5]  }
  0x47   : > { %p1103_p8 = scmp.ne.s32.totalorder %s1378_s7, %s1102_s10  ;;  %s1107_s15 = sshll.u32 %s1226_s11, 4  ;;  %s1108_s15 = int_to_ptr.vmem [resolvable:$false] %s1107_s15 }
  0x48   : > { %s1109_s2 = scalar_lea.vmem %s1108_s15, 256  ;;  %p1110_p3 = scmp.lt.s32.totalorder %s1378_s7, %s1108_s15 }
  0x49   : > { %p1105_p10 = pnand %p1103_p8, %p1089_p0  ;;  %p1111_p7 = scmp.lt.s32.totalorder %s1109_s2, %s1102_s10 }
  0x4b   : > { %p1106_p13 = pneg %p1105_p10  ;;  %p1112_p9 = por %p1111_p7, %p1110_p3 }
  0x4d   : > { %p1113_p2 = pnand %p1112_p9, %p1106_p13 }
  0x4f   : > { %1116 = shalt.err (!%p1113_p2)
}
  0x50   : > { %1000 = dma.hbm_to_vmem [thread:$0]  (!%p1374_p11), %s1371_s28, 128, %s1378_s7, %s203_s23  }
  0x51   : > { %s221_s8 = sand.u32 1, %s1221_s21   ;;  %s225_s16 = scalar_lea.vmem [#allocation8], %s1366_s12 }
  0x52   : > { %s233_s27 = sshll.u32 %s225_s16, 4  ;;  %s222_s29 = scalar_lea.sflag [#allocation9], %s221_s8  ;;  %s234_s27 = int_to_ptr.vmem [resolvable:$true] %s233_s27 }
  0x53   : > { %s1117_s13 = scalar_lea.hbm %s1383_s17, 128  ;;  %s1122_s11 = scalar_lea.hbm %s1748_s1, 256 }
  0x54   : > { %p1118_p5 = scmp.ne.s32.totalorder %s1383_s17, %s1117_s13  ;;  %p1123_p6 = scmp.lt.u32.totalorder %s1383_s17, %s1748_s1 }
  0x55   : > { %p1124_p8 = scmp.lt.u32.totalorder %s1122_s11, %s1117_s13  ;;  %p1126_p13 = scmp.lt.u32.totalorder %s1117_s13, %s1383_s17 }
  0x56   : > { %p1120_p1 = pnand %p1118_p5, %p1089_p0 }
  0x57   : > { %p1125_p10 = por %p1124_p8, %p1123_p6 }
  0x58   : > { %p1121_p4 = pneg %p1120_p1 }
  0x59   : > { %p1127_p3 = por %p1126_p13, %p1125_p10 }
  0x5b   : > { %p1128_p7 = pnand %p1127_p3, %p1121_p4 }
  0x5d   : > { %1131 = shalt.err (!%p1128_p7)
}
  0x5e   : > { %s1132_s12 = scalar_lea.vmem %s234_s27, 128  ;;  %s1227_s28 = smov [#allocation8]  }
  0x5f   : > { %p1133_p9 = scmp.ne.s32.totalorder %s234_s27, %s1132_s12  ;;  %s1137_s7 = sshll.u32 %s1227_s28, 4  ;;  %s1138_s7 = int_to_ptr.vmem [resolvable:$false] %s1137_s7 }
  0x60   : > { %s1139_s23 = scalar_lea.vmem %s1138_s7, 256  ;;  %p1140_p1 = scmp.lt.s32.totalorder %s234_s27, %s1138_s7 }
  0x61   : > { %p1135_p2 = pnand %p1133_p9, %p1089_p0  ;;  %p1141_p12 = scmp.lt.s32.totalorder %s1139_s23, %s1132_s12 }
  0x63   : > { %p1136_p5 = pneg %p1135_p2  ;;  %p1142_p6 = por %p1141_p12, %p1140_p1 }
  0x65   : > { %p1143_p8 = pnand %p1142_p6, %p1136_p5 }
  0x67   : > { %1146 = shalt.err (!%p1143_p8)
}
  0x68   : > { %1003 = dma.hbm_to_vmem [thread:$0]  (!%p1374_p11), %s1383_s17, 128, %s234_s27, %s222_s29  }
  0x69   : > { %p1767_p4 = scmp.ne.s32.totalorder %s1760_s26, 0 }
  0x6a   : > { %s1434_s8 = sand.u32 (!%p1767_p4), 1, %s1213_s19   ;;  %p1768_p12 = scmp.ne.s32.totalorder (!%p1767_p4), %s1758_s24, 0 }
  0x6b   : > { %242 = sbr.rel (%p1767_p4) target bundleno = 879 (0x36f), region = 40  ;;  %s1437_s16 = sshll.u32 (!%p1767_p4), %s1434_s8, 3 }
  0x6c   : > { %s245_s13 = scalar_lea.sflag (!%p1767_p4), [#allocation6], %s1434_s8  ;;  %s248_s6 = scalar_lea.vmem (!%p1767_p4), [#allocation5], %s1437_s16 }
  0x72   : > { %1192 = dma.done.wait (%p1768_p12), %s245_s13, 128  }
  0x73   : > { %1194 = vsyncadd (%p1768_p12), %s245_s13, 4294967168  ;;  %s253_s26 = sand.u32 1, %s1290_s22   ;;  %s257_s17 = scalar_lea.vmem [#allocation8], %s1437_s16 }
  0x74   : > { %s254_s14 = scalar_lea.sflag [#allocation9], %s253_s26 }
  0x75   : > { %1196 = dma.done.wait (%p1768_p12), %s254_s14, 128  }
  0x76   : > { %1198 = vsyncadd (%p1768_p12), %s254_s14, 4294967168  ;;  %p1769_p11 = scmp.eq.s32.totalorder %s1290_s22, 0 }
  0x78   : > { %1200 = dma.done.wait (%p1769_p11), [#allocation9], 512   ;;  %p1770_p0 = pmov %p1769_p11 }
  0x79   : > { %v293_v0 = vld [vmem:[%s248_s6] sm:$0xff]  ;;  %v299_v1 = vld [vmem:[%s257_s17] sm:$0xff]  ;;  %s1228_s27 = smov 16   ;;  %s1229_s24 = smov 17   ;;  %v1234_v6 = vmov 0.0   ;;  %v328_v7 = vlaneseq  ;;  %vm523_vm8 = vcmask 588800  }
  0x7a   : > { %1202 = vsyncadd (%p1770_p0), [#allocation9], 4294966784  ;;  %297 = vst [vmem:[#allocation2] sm:$0xf] %v293_v0  ;;  %v301_v2 = vcombine.low %v299_v1, %v299_v1  ;;  %v295_v3 = vcombine.high %v293_v0, %v293_v0  ;;  %s1230_s29 = smov 15   ;;  %s1231_s10 = smov 1   ;;  %591 = vmatprep.mubr.f32.mxu0 %v1234_v6  ;;  %783 = vmatprep.mubr.f32.mxu1 %v1234_v6 }
  0x7b   : > { %304 = vst [vmem:[#allocation2 + $0x8] sm:$0xf0] %v299_v1  ;;  %s1232_s11 = smov 127   ;;  %s1233_s15 = smov 113   ;;  %v335_v8 = vshrl.u32 %v328_v7, 7  ;;  %v1493_v9 = vand.u32 127, %v328_v7 }
  0x7c   : > { %303 = vst [vmem:[#allocation2] sm:$0xf0] %v301_v2  ;;  %298 = vst [vmem:[#allocation2 + $0x8] sm:$0xf] %v295_v3  ;;  %s1235_s2 = smov 112   ;;  %s1236_s12 = smov 111  }
  0x7d   : > { %v1495_v10 = vsub.s32 0, %v335_v8  ;;  %v309_v11 = vld [vmem:[#allocation10 + $0x1] ss:$8 sm:$0x3]  ;;  %v1497_v12 = vsub.s32 1, %v335_v8  ;;  %vm352_vm0 = vcmp.lt.s32.totalorder %v1493_v9, 16 }
  0x7e   : > { %v307_v13 = vld [vmem:[#allocation10] ss:$8 sm:$0x3]  ;;  %vm330_vm1 = vcmp.lt.s32.totalorder %v1493_v9, 17  ;;  %vm374_vm2 = vcmp.lt.s32.totalorder %v1493_v9, 15  ;;  %vm396_vm3 = vcmp.lt.s32.totalorder %v1493_v9, 1 }
  0x7f   : > { %v1501_v16 = vrot.slane %v309_v11, %v1495_v10  ;;  %v1505_v17 = vrot.slane %v307_v13, %v1495_v10  ;;  %v1508_v18 = vrot.slane %v307_v13, %v1497_v12  ;;  %v1511_v19 = vrot.slane %v309_v11, %v1497_v12  ;;  %v311_v28 = vld [vmem:[#allocation10 + $0x2] ss:$8 sm:$0x3]  ;;  %v313_v31 = vld [vmem:[#allocation10 + $0x3] ss:$8 sm:$0x3] }
  0x80   : > { %v1527_v36 = vrot.slane %v311_v28, %v1495_v10  ;;  %v1530_v37 = vrot.slane %v311_v28, %v1497_v12  ;;  %v1534_v38 = vrot.slane %v313_v31, %v1495_v10  ;;  %v1537_v39 = vrot.slane %v313_v31, %v1497_v12  ;;  %v317_v40 = vld [vmem:[#allocation10 + $0x5] ss:$8 sm:$0x3]  ;;  %v319_v61 = vld [vmem:[#allocation10 + $0x6] ss:$8 sm:$0x3] }
  0x81   : > { %vm420_vm4 = vcmp.lt.s32.totalorder %v1493_v9, 127  ;;  %v1549_v47 = vrot.slane %v317_v40, %v1495_v10  ;;  %v1552_v48 = vrot.slane %v317_v40, %v1497_v12  ;;  %v321_v62 = vld [vmem:[#allocation10 + $0x7] ss:$8 sm:$0x3]  ;;  %vm442_vm5 = vcmp.lt.s32.totalorder %v1493_v9, 113  ;;  %s944_s6 = sshll.u32 %s1290_s22, 7 }
  0x82   : > { %v1568_v3 = vrot.slane %v319_v61, %v1495_v10  ;;  %v1571_v6 = vrot.slane %v319_v61, %v1497_v12  ;;  %vm464_vm6 = vcmp.lt.s32.totalorder %v1493_v9, 112  ;;  %v1575_v8 = vrot.slane %v321_v62, %v1495_v10  ;;  %v323_v13 = vld [vmem:[#allocation10 + $0x10] ss:$8 sm:$0x3]  ;;  %s292_s26 = scalar_lea.vmem [#allocation11], %s1437_s16  ;;  %p1771_p13 = scmp.ne.s32.totalorder %s1765_s9, 0 }
  0x83   : > { %v1455_v4 = vld [vmem:[#allocation2] sm:$0xff]  ;;  %v1461_v5 = vld [vmem:[#allocation2 + $0x8] sm:$0xff]  ;;  %v1578_v11 = vrot.slane %v321_v62, %v1497_v12  ;;  %vm486_vm7 = vcmp.lt.s32.totalorder %v1493_v9, 111  ;;  %vm682_vm9 = vcmp.lt.s32.totalorder %v328_v7, 256  ;;  %vm712_vm10 = vcmask 1040384   ;;  %s816_s14 = sshll.u32 %s292_s26, 4  ;;  %s1705_s14 = int_to_ptr.vmem [resolvable:$true] %s816_s14 }
  0x84   : > { %348 = vrot.lane.b32.xlu1 %v1455_v4, %s1228_s27  ;;  %324 = vrot.lane.b32.xlu0 %v1455_v4, %s1229_s24  ;;  %vm1237_vm11 = vmmov 1   ;;  %v687_v9 = vld [vmem:[%s1751_s4] sm:$0xf]  ;;  %vm708_vm13 = vcmask 596992   ;;  %s1238_s22 = smov [#allocation11]  }
  0x85   : > { %vm978_vm12 = vmpackc.low %vm712_vm10, %vm1237_vm11  ;;  %s1151_s16 = sshll.u32 %s1238_s22, 4  ;;  %s1152_s16 = int_to_ptr.vmem [resolvable:$false] %s1151_s16 }
  0x86   : > { %p1154_p9 = scmp.lt.s32.totalorder %s1705_s14, %s1152_s16 }
  0x88   : > { %350 = vrot.lane.b32.xlu1 %v1461_v5, %s1228_s27  ;;  %326 = vrot.lane.b32.xlu0 %v1461_v5, %s1229_s24 }
  0x8c   : > { %372 = vrot.lane.b32.xlu1 %v1461_v5, %s1230_s29  ;;  %370 = vrot.lane.b32.xlu0 %v1455_v4, %s1230_s29 }
  0x90   : > { %394 = vrot.lane.b32.xlu1 %v1461_v5, %s1231_s10  ;;  %392 = vrot.lane.b32.xlu0 %v1455_v4, %s1231_s10 }
  0x94   : > { %418 = vrot.lane.b32.xlu1 %v1461_v5, %s1232_s11  ;;  %416 = vrot.lane.b32.xlu0 %v1455_v4, %s1232_s11 }
  0x98   : > { %440 = vrot.lane.b32.xlu1 %v1461_v5, %s1233_s15  ;;  %438 = vrot.lane.b32.xlu0 %v1455_v4, %s1233_s15 }
  0x9c   : > { %462 = vrot.lane.b32.xlu1 %v1461_v5, %s1235_s2  ;;  %460 = vrot.lane.b32.xlu0 %v1455_v4, %s1235_s2 }
  0xa0   : > { %484 = vrot.lane.b32.xlu1 %v1461_v5, %s1236_s12  ;;  %482 = vrot.lane.b32.xlu0 %v1455_v4, %s1236_s12 }
  0xf6   : > { %v349_v14 = vpop.permute.xlu1 %348  ;;  %v325_v15 = vpop.permute.xlu0 %324 }
  0xfa   : > { %v351_v20 = vpop.permute.xlu1 %350  ;;  %v327_v21 = vpop.permute.xlu0 %326 }
  0xfb   : > { %v353_v22 = vsel %vm352_vm0, %v349_v14, %v351_v20  ;;  %v354_v23 = vsel %vm352_vm0, %v351_v20, %v349_v14  ;;  %v331_v24 = vsel %vm330_vm1, %v325_v15, %v327_v21  ;;  %v332_v25 = vsel %vm330_vm1, %v327_v21, %v325_v15 }
  0xfc   : > { %v366_v26 = vmul.f32 %v1501_v16, %v354_v23  ;;  %v344_v27 = vmul.f32 %v1505_v17, %v332_v25  ;;  %v345_v29 = vmul.f32 %v1508_v18, %v331_v24  ;;  %v367_v30 = vmul.f32 %v1511_v19, %v353_v22 }
  0xfd   : > { %v1590_v22 = vrot.slane %v323_v13, %v1497_v12 }
  0xfe   : > { %v373_v32 = vpop.permute.xlu1 %372  ;;  %v371_v33 = vpop.permute.xlu0 %370  ;;  %v945_v34 = vpack.c.bf16 %v367_v30, %v345_v29  ;;  %v947_v35 = vpack.c.bf16 %v366_v26, %v344_v27  ;;  %v1597_v27 = vrot.slane %v323_v13, %v1495_v10  ;;  %v504_v10 = vld [vmem:[%s1750_s3] sm:$0xff] }
  0xff   : > { %v375_v41 = vsel %vm374_vm2, %v371_v33, %v373_v32  ;;  %v376_v42 = vsel %vm374_vm2, %v373_v32, %v371_v33 }
 0x100   : > { %946 = vmatprep.subr.bf16.mxu0 %v945_v34  ;;  %v388_v49 = vmul.f32 %v1527_v36, %v376_v42  ;;  %v389_v50 = vmul.f32 %v1530_v37, %v375_v41  ;;  %v315_v41 = vld [vmem:[#allocation10 + $0x4] ss:$8 sm:$0x3] }
 0x101   : > { %948 = vmatpush1.bf16.msra.mxu0 %v947_v35  ;;  %685 = vst.msk [vmem:[#allocation4 + $0x90] ss:$8 sm:$0x3] %vm682_vm9, %v315_v41 }
 0x102   : > { %v395_v43 = vpop.permute.xlu1 %394  ;;  %v393_v44 = vpop.permute.xlu0 %392 }
 0x103   : > { %v397_v45 = vsel %vm396_vm3, %v393_v44, %v395_v43  ;;  %v398_v46 = vsel %vm396_vm3, %v395_v43, %v393_v44 }
 0x104   : > { %v410_v51 = vmul.f32 %v1534_v38, %v398_v46  ;;  %v411_v52 = vmul.f32 %v1537_v39, %v397_v45 }
 0x106   : > { %v419_v53 = vpop.permute.xlu1 %418  ;;  %v417_v54 = vpop.permute.xlu0 %416  ;;  %v949_v55 = vpack.c.bf16 %v411_v52, %v389_v50  ;;  %v951_v56 = vpack.c.bf16 %v410_v51, %v388_v49 }
 0x107   : > { %v421_v57 = vsel %vm420_vm4, %v417_v54, %v419_v53  ;;  %v422_v58 = vsel %vm420_vm4, %v419_v53, %v417_v54 }
 0x108   : > { %v434_v59 = vmul.f32 %v1549_v47, %v421_v57  ;;  %v435_v60 = vmul.f32 %v1552_v48, %v422_v58  ;;  %950 = vmatprep.subr.bf16.mxu0 %v949_v55 }
 0x109   : > { %952 = vmatpush1.bf16.msra.mxu0 %v951_v56 }
 0x10a   : > { %v441_v63 = vpop.permute.xlu1 %440  ;;  %v439_v0 = vpop.permute.xlu0 %438  ;;  %v953_v1 = vpack.c.bf16 %v435_v60, %v1461_v5  ;;  %v955_v2 = vpack.c.bf16 %v434_v59, %v1455_v4 }
 0x10b   : > { %v443_v5 = vsel %vm442_vm5, %v439_v0, %v441_v63  ;;  %v444_v4 = vsel %vm442_vm5, %v441_v63, %v439_v0 }
 0x10c   : > { %954 = vmatprep.subr.bf16.mxu0 %v953_v1  ;;  %v456_v23 = vmul.f32 %v1568_v3, %v443_v5  ;;  %v457_v24 = vmul.f32 %v1571_v6, %v444_v4 }
 0x10d   : > { %956 = vmatpush1.bf16.msra.mxu0 %v955_v2 }
 0x10e   : > { %v463_v14 = vpop.permute.xlu1 %462  ;;  %v461_v15 = vpop.permute.xlu0 %460 }
 0x10f   : > { %v465_v20 = vsel %vm464_vm6, %v461_v15, %v463_v14  ;;  %v466_v21 = vsel %vm464_vm6, %v463_v14, %v461_v15 }
 0x110   : > { %v478_v25 = vmul.f32 %v1575_v8, %v465_v20  ;;  %v479_v26 = vmul.f32 %v1578_v11, %v466_v21 }
 0x112   : > { %v485_v28 = vpop.permute.xlu1 %484  ;;  %v957_v29 = vpack.c.bf16 %v479_v26, %v457_v24  ;;  %v483_v30 = vpop.permute.xlu0 %482  ;;  %v959_v31 = vpack.c.bf16 %v478_v25, %v456_v23 }
 0x113   : > { %v487_v32 = vsel %vm486_vm7, %v483_v30, %v485_v28  ;;  %v488_v12 = vsel %vm486_vm7, %v485_v28, %v483_v30 }
 0x114   : > { %958 = vmatprep.subr.bf16.mxu0 %v957_v29  ;;  %v501_v33 = vmul.f32 %v1590_v22, %v488_v12  ;;  %v500_v34 = vmul.f32 %v1597_v27, %v487_v32 }
 0x115   : > { %960 = vmatpush1.bf16.msra.mxu0 %v959_v31 }
 0x116   : > { %543 = vmatprep.subr.mxu0 %v501_v33 }
 0x119   : > { %544 = vmatpush1.msra.mxu0 %v500_v34  ;;  %v707_v34 = vld [vmem:[#allocation4 + $0x98] sm:$0x1] }
 0x11a   : > { %933 = vmatmul.mubr.msk.f32.vlgmr.msra.gmra.mrb[0].mxu0 %vm523_vm8, %v504_v10  ;;  %v706_v10 = vld [vmem:[#allocation4 + $0x90] sm:$0x1] }
 0x1ed   : > { %v1608_v35 = vpop.f32.mrb[0].mxu0 }
 0x1ee   : > { %598 = vrot.lane.b32.xlu0 %v1608_v35, %s1229_s24  ;;  %v1612_v40 = vpop.f32.mrb[1].mxu0 }
 0x1ef   : > { %600 = vrot.lane.b32.xlu1 %v1612_v40, %s1229_s24  ;;  %s1703_s24 = scalar_lea.hbm %s1752_s5, %s944_s6 }
 0x1f2   : > { %608 = vrot.lane.b32.xlu0 %v1608_v35, %s1228_s27 }
 0x1f3   : > { %610 = vrot.lane.b32.xlu1 %v1612_v40, %s1228_s27 }
 0x1f6   : > { %618 = vrot.lane.b32.xlu0 %v1608_v35, %s1230_s29 }
 0x1f7   : > { %620 = vrot.lane.b32.xlu1 %v1612_v40, %s1230_s29  ;;  %s802_s29 = scalar_lea.sflag [#allocation7], %s1434_s8 }
 0x1fa   : > { %628 = vrot.lane.b32.xlu0 %v1608_v35, %s1231_s10 }
 0x1fb   : > { %630 = vrot.lane.b32.xlu1 %v1612_v40, %s1231_s10  ;;  %s1147_s10 = scalar_lea.vmem %s1705_s14, 128 }
 0x1fc   : > { %p1148_p10 = scmp.ne.s32.totalorder %s1705_s14, %s1147_s10 }
 0x1fe   : > { %640 = vrot.lane.b32.xlu0 %v1608_v35, %s1232_s11  ;;  %p1149_p3 = pnand %p1148_p10, %p1771_p13 }
 0x1ff   : > { %642 = vrot.lane.b32.xlu1 %v1612_v40, %s1232_s11  ;;  %s1153_s11 = scalar_lea.vmem %s1152_s16, 256 }
 0x200   : > { %p1150_p7 = pneg %p1149_p3  ;;  %p1155_p2 = scmp.lt.s32.totalorder %s1153_s11, %s1147_s10 }
 0x202   : > { %650 = vrot.lane.b32.xlu0 %v1608_v35, %s1233_s15  ;;  %p1156_p5 = por %p1155_p2, %p1154_p9 }
 0x203   : > { %652 = vrot.lane.b32.xlu1 %v1612_v40, %s1233_s15 }
 0x204   : > { %p1157_p1 = pnand %p1156_p5, %p1150_p7 }
 0x206   : > { %660 = vrot.lane.b32.xlu0 %v1608_v35, %s1235_s2 }
 0x207   : > { %662 = vrot.lane.b32.xlu1 %v1612_v40, %s1235_s2 }
 0x20a   : > { %670 = vrot.lane.b32.xlu0 %v1608_v35, %s1236_s12 }
 0x20b   : > { %672 = vrot.lane.b32.xlu1 %v1612_v40, %s1236_s12 }
 0x260   : > { %v599_v7 = vpop.permute.xlu0 %598 }
 0x261   : > { %v601_v42 = vpop.permute.xlu1 %600 }
 0x262   : > { %v602_v43 = vsel %vm330_vm1, %v599_v7, %v601_v42  ;;  %v603_v44 = vsel %vm330_vm1, %v601_v42, %v599_v7 }
 0x263   : > { %v604_v45 = vmul.f32 %v603_v44, %v1505_v17  ;;  %v605_v46 = vmul.f32 %v602_v43, %v1508_v18 }
 0x264   : > { %v609_v49 = vpop.permute.xlu0 %608 }
 0x265   : > { %v611_v50 = vpop.permute.xlu1 %610 }
 0x266   : > { %v612_v51 = vsel %vm352_vm0, %v609_v49, %v611_v50  ;;  %v613_v52 = vsel %vm352_vm0, %v611_v50, %v609_v49 }
 0x267   : > { %v614_v53 = vmul.f32 %v613_v52, %v1501_v16  ;;  %v615_v54 = vmul.f32 %v612_v51, %v1511_v19 }
 0x268   : > { %v619_v55 = vpop.permute.xlu0 %618 }
 0x269   : > { %v621_v56 = vpop.permute.xlu1 %620  ;;  %v961_v57 = vpack.c.bf16 %v615_v54, %v605_v46  ;;  %v963_v58 = vpack.c.bf16 %v614_v53, %v604_v45 }
 0x26a   : > { %v622_v17 = vsel %vm374_vm2, %v619_v55, %v621_v56  ;;  %v623_v18 = vsel %vm374_vm2, %v621_v56, %v619_v55 }
 0x26b   : > { %v624_v59 = vmul.f32 %v623_v18, %v1527_v36  ;;  %v625_v60 = vmul.f32 %v622_v17, %v1530_v37  ;;  %962 = vmatprep.subr.bf16.mxu1 %v961_v57 }
 0x26c   : > { %v629_v61 = vpop.permute.xlu0 %628  ;;  %964 = vmatpush1.bf16.msra.mxu1 %v963_v58 }
 0x26d   : > { %v631_v16 = vpop.permute.xlu1 %630 }
 0x26e   : > { %v632_v19 = vsel %vm396_vm3, %v629_v61, %v631_v16  ;;  %v633_v62 = vsel %vm396_vm3, %v631_v16, %v629_v61 }
 0x26f   : > { %v634_v63 = vmul.f32 %v633_v62, %v1534_v38  ;;  %v635_v0 = vmul.f32 %v632_v19, %v1537_v39 }
 0x270   : > { %v641_v1 = vpop.permute.xlu0 %640 }
 0x271   : > { %v643_v2 = vpop.permute.xlu1 %642  ;;  %v965_v13 = vpack.c.bf16 %v635_v0, %v625_v60  ;;  %v967_v36 = vpack.c.bf16 %v634_v63, %v624_v59 }
 0x272   : > { %v644_v37 = vsel %vm420_vm4, %v641_v1, %v643_v2  ;;  %v645_v5 = vsel %vm420_vm4, %v643_v2, %v641_v1 }
 0x273   : > { %v646_v4 = vmul.f32 %v644_v37, %v1549_v47  ;;  %v647_v14 = vmul.f32 %v645_v5, %v1552_v48  ;;  %966 = vmatprep.subr.bf16.mxu1 %v965_v13 }
 0x274   : > { %v651_v15 = vpop.permute.xlu0 %650  ;;  %968 = vmatpush1.bf16.msra.mxu1 %v967_v36 }
 0x275   : > { %v653_v38 = vpop.permute.xlu1 %652  ;;  %v969_v39 = vpack.c.bf16 %v647_v14, %v1612_v40  ;;  %v971_v20 = vpack.c.bf16 %v646_v4, %v1608_v35 }
 0x276   : > { %v654_v21 = vsel %vm442_vm5, %v651_v15, %v653_v38  ;;  %v655_v23 = vsel %vm442_vm5, %v653_v38, %v651_v15 }
 0x277   : > { %v656_v24 = vmul.f32 %v654_v21, %v1568_v3  ;;  %v657_v47 = vmul.f32 %v655_v23, %v1571_v6  ;;  %970 = vmatprep.subr.bf16.mxu1 %v969_v39 }
 0x278   : > { %v661_v48 = vpop.permute.xlu0 %660  ;;  %972 = vmatpush1.bf16.msra.mxu1 %v971_v20 }
 0x279   : > { %v663_v25 = vpop.permute.xlu1 %662 }
 0x27a   : > { %v664_v26 = vsel %vm464_vm6, %v661_v48, %v663_v25  ;;  %v665_v28 = vsel %vm464_vm6, %v663_v25, %v661_v48 }
 0x27b   : > { %v666_v29 = vmul.f32 %v664_v26, %v1575_v8  ;;  %v667_v30 = vmul.f32 %v665_v28, %v1578_v11 }
 0x27c   : > { %v671_v31 = vpop.permute.xlu0 %670 }
 0x27d   : > { %v673_v32 = vpop.permute.xlu1 %672  ;;  %v973_v12 = vpack.c.bf16 %v667_v30, %v657_v47  ;;  %v975_v3 = vpack.c.bf16 %v666_v29, %v656_v24 }
 0x27e   : > { %v674_v6 = vsel %vm486_vm7, %v671_v31, %v673_v32  ;;  %v675_v33 = vsel %vm486_vm7, %v673_v32, %v671_v31 }
 0x27f   : > { %v676_v35 = vmul.f32 %v674_v6, %v1597_v27  ;;  %v677_v40 = vmul.f32 %v675_v33, %v1590_v22  ;;  %974 = vmatprep.subr.bf16.mxu1 %v973_v12 }
 0x280   : > { %976 = vmatpush1.bf16.msra.mxu1 %v975_v3 }
 0x281   : > { %v977_v8 = vpack.c.bf16 %v707_v34, %v677_v40  ;;  %v980_v11 = vpack.c.bf16 %v706_v10, %v676_v35 }
 0x283   : > { %979 = vmatprep.subr.msk.bf16.mxu1 %vm978_vm12, %v977_v8 }
 0x284   : > { %982 = vmatpush1.bf16.msk.msra.mxu1 %vm978_vm12, %v980_v11 }
 0x287   : > { %936 = vmatmul.mubr.msk.f32.vlgmr.msra.gmra.mrb[0].mxu1 %vm708_vm13, %v687_v9 }
 0x35a   : > { %v785_v27 = vpop.f32.mrb[0].mxu1 }
 0x35b   : > { %vm790_vm14 = vcmp.ge.f32.partialorder %v785_v27, 0.0  ;;  %v792_v22 = vmul.f32 0.01, %v785_v27  ;;  %v787_v41 = vpop.f32.mrb[1].mxu1 }
 0x35c   : > { %vm791_vm15 = vcmp.ge.f32.partialorder %v787_v41, 0.0  ;;  %v793_v7 = vmul.f32 0.01, %v787_v41 }
 0x35d   : > { %v794_v42 = vsel %vm790_vm14, %v785_v27, %v792_v22 }
 0x35e   : > { %v795_v43 = vsel %vm791_vm15, %v787_v41, %v793_v7 }
 0x35f   : > { %v798_v44 = vcombine.low %v794_v42, %v795_v43 }
 0x361   : > { %800 = vst [vmem:[%s292_s26] sm:$0xff] %v798_v44 }
 0x362   : > { %1160 = shalt.err (!%p1157_p1)
}
 0x363   : > { %s1161_s8 = scalar_lea.hbm %s1703_s24, 128  ;;  %s1165_s12 = scalar_lea.hbm %s1752_s5, 256 }
 0x364   : > { %p1162_p6 = scmp.ne.s32.totalorder %s1703_s24, %s1161_s8  ;;  %p1166_p12 = scmp.lt.u32.totalorder %s1703_s24, %s1752_s5 }
 0x365   : > { %p1167_p11 = scmp.lt.u32.totalorder %s1165_s12, %s1161_s8  ;;  %p1169_p10 = scmp.lt.u32.totalorder %s1161_s8, %s1703_s24 }
 0x366   : > { %p1163_p8 = pnand %p1162_p6, %p1771_p13 }
 0x367   : > { %p1168_p0 = por %p1167_p11, %p1166_p12 }
 0x368   : > { %p1164_p4 = pneg %p1163_p8 }
 0x369   : > { %p1170_p3 = por %p1169_p10, %p1168_p0 }
 0x36b   : > { %p1171_p7 = pnand %p1170_p3, %p1164_p4 }
 0x36d   : > { %1174 = shalt.err (!%p1171_p7)
}
 0x36e   : > { %991 = dma.vmem_to_hbm [thread:$0]  (%p1771_p13), %s1705_s14, 128, %s1703_s24, %s802_s29  }
 0x36f PF: > { %s828_s23 = sand.u32 1, %s1209_s18   ;;  %p1772_p9 = scmp.ne.s32.totalorder %s1759_s25, 0 }
 0x370   : > { %p1773_p2 = scmp.ge.s32.totalorder %s1221_s21, 2  ;;  %s829_s13 = scalar_lea.sflag [#allocation7], %s828_s23 }
 0x372   : > { %p1005_p5 = pnand %p1773_p2, %p1772_p9 }
 0x374   : > { %1204 = dma.done.wait (!%p1005_p5), %s829_s13, 128  }
 0x375   : > { %1206 = vsyncadd (!%p1005_p5), %s829_s13, 4294967168  ;;  %s1774_s6 = sld [smem:[#allocation16_spill]]  ;;  %p21_p1 = scmp.ge.s32.totalorder %s1325_s30, 4  }
 0x376   : > { %s1775_s18 = smov %s1213_s19  ;;  %s1776_s19 = smov %s1217_s20 }
 0x377   : > { %s1778_s21 = smov %s1325_s30  ;;  %23 = sbr.rel (!%p21_p1) target bundleno = 9 (0x9), region = 111 }
 0x37b   : > { %s1777_s20 = smov %s1774_s6 }
 0x37e   :  { %834 = vsyncpa [#allocation6], 1 }
 0x37f   :  { %836 = vsyncpa [#allocation6 + $0x1], 1 }
 0x380   :  { %837 = vsyncpa [#allocation9], 1 }
 0x381   :  { %839 = vsyncpa [#allocation9 + $0x1], 1 }
 0x382   :  { %840 = vsyncpa [#allocation7], 1 }
 0x383   :  { %842 = vsyncpa [#allocation7 + $0x1], 1 }

</bundles_post_ra>
